<compile_context>
chip_gen: v7x
topology: tpu7x:2x2x1
jax: 0.10.0
libtpu: 0.0.40
codegen_flags: <defaults>
</compile_context>

<pallas_src>
from functools import partial

import jax
import jax.numpy as jnp
import numpy as np
from jax.experimental import pallas as pl
from jax.experimental.pallas import tpu as pltpu

EPS = 1e-5          # nn.BatchNorm1d default
NEG_SLOPE = 0.01    # nn.LeakyReLU default negative_slope
TAIL = 8            # zero rows appended so shifted slices stay in-bounds


def _kernel(x_ref, w2_ref, w3_ref, pk_ref, o_ref, *, B, P, L0, H, H2, V, K):
    R = B * P   # rows in the batch-stacked slab

    # row index within each batch segment (for masking padded rows)
    rows = jax.lax.broadcasted_iota(jnp.int32, (R, 1), 0)
    rows_in_seg = rows % P

    def extend(y):
        # append TAIL zero rows so y_ext[k:k+R] (k < K) never reads OOB
        return jnp.concatenate(
            [y, jnp.zeros((TAIL, y.shape[1]), y.dtype)], axis=0)

    def conv4_mxu(y, w_ref):
        # y: (R, C_in); w_ref: (K, C_in, C_out)
        # K accumulated shifted sub-slab matmuls (no im2col lane-concat).
        y_ext = extend(y)
        out = jnp.dot(y_ext[0:R, :], w_ref[0],
                      preferred_element_type=jnp.float32)
        for k in range(1, K):
            out = out + jnp.dot(y_ext[k:k + R, :], w_ref[k],
                                preferred_element_type=jnp.float32)
        return out

    def conv4_vpu_cin1(y, w_rows):
        # conv1 (C_in == 1): K shifted rank-1 broadcast multiplies on the VPU.
        # y: (R, 1); w_rows: (K, C_out)
        y_ext = extend(y)
        out = y_ext[0:R, :] * w_rows[0:1, :]
        for k in range(1, K):
            out = out + y_ext[k:k + R, :] * w_rows[k:k + 1, :]
        return out

    def bn_lrelu(y, L_out, gamma, beta):
        # zero padded segment rows so one-pass stats only see true rows
        y = jnp.where(rows_in_seg < L_out, y, 0.0)
        inv_cnt = 1.0 / float(B * L_out)
        s1 = jnp.sum(y, axis=0, keepdims=True)
        s2 = jnp.sum(y * y, axis=0, keepdims=True)
        mean = s1 * inv_cnt
        var = s2 * inv_cnt - mean * mean          # one-pass (biased) variance
        s = gamma * jax.lax.rsqrt(var + EPS)      # folded per-channel scale
        t = beta - mean * s                       # folded per-channel shift
        z = y * s + t
        # padded rows now hold t; they never feed a *valid* row downstream
        # (valid conv taps stay inside the true rows), so no re-zeroing needed.
        return jnp.maximum(z, NEG_SLOPE * z)      # LeakyReLU

    # unpack the small-parameter slab
    pk = pk_ref[...]
    g2, be2 = pk[0:1, 0:H], pk[1:2, 0:H]
    g3, be3 = pk[2:3, 0:H2], pk[3:4, 0:H2]
    g4, be4 = pk[4:5, 0:V], pk[5:6, 0:V]
    b4 = pk[6:7, 0:V]
    w1 = pk[8:8 + K, 0:H]        # (K, H)      conv1 weight
    w4 = pk[16:16 + V, 0:V]      # (V, V)      conv_out weight (C_in, C_out)

    L1 = L0 - (K - 1)
    L2 = L1 - (K - 1)
    L3 = L2 - (K - 1)

    y = conv4_vpu_cin1(x_ref[...], w1)           # conv1
    y = bn_lrelu(y, L1, g2, be2)                 # batchnorm2 + lrelu
    y = conv4_mxu(y, w2_ref)                     # conv2
    y = bn_lrelu(y, L2, g3, be3)                 # batchnorm3 + lrelu
    y = conv4_mxu(y, w3_ref)                     # conv3
    y = bn_lrelu(y, L3, g4, be4)                 # batchnorm4 + lrelu

    # conv_out (1x1, bias) on the whole slab; MaxPool1d(kernel_size=V) reads
    # only rows [b*P, b*P+V) of each segment (all valid rows), then sigmoid*2.
    z = jnp.dot(y, w4, preferred_element_type=jnp.float32) + b4
    pooled = jnp.concatenate(
        [jnp.max(z[b * P:b * P + V, :], axis=0, keepdims=True)
         for b in range(B)],
        axis=0)                                  # (B, V)
    o_ref[...] = jax.nn.sigmoid(pooled) * 2.0


def cnn_generator(latent, params):
    """latent: (B, latent_dim) float32 -> (B, variables_out) float32."""
    B, L0 = latent.shape
    K, cin1, H = params["w1"].shape
    assert cin1 == 1
    H2 = params["w2"].shape[2]
    V = params["w3"].shape[2]
    L3 = L0 - 3 * (K - 1)
    assert V <= L3 < 2 * V, "maxpool must yield a single window, as in the module"

    P = ((L0 + 7) // 8) * 8       # sublane-aligned segment length
    R = B * P

    # batch-stacked, channel-last slab: segment b holds latent[b] in rows
    # [b*P, b*P+L0); padded rows are zero.
    x = jnp.pad(latent.astype(jnp.float32),
                ((0, 0), (0, P - L0))).reshape(R, 1)

    # pack all small parameters into one (8,128)-padded slab -> 1 DMA
    pk = np.zeros((24, 128), np.float32)
    pk[0, :H] = np.asarray(params["g2"]).reshape(-1)
    pk[1, :H] = np.asarray(params["be2"]).reshape(-1)
    pk[2, :H2] = np.asarray(params["g3"]).reshape(-1)
    pk[3, :H2] = np.asarray(params["be3"]).reshape(-1)
    pk[4, :V] = np.asarray(params["g4"]).reshape(-1)
    pk[5, :V] = np.asarray(params["be4"]).reshape(-1)
    pk[6, :V] = np.asarray(params["b4"]).reshape(-1)
    pk[8:8 + K, :H] = np.asarray(params["w1"]).reshape(K, H)
    pk[16:16 + V, :V] = np.asarray(params["w4"])
    pk = jnp.asarray(pk)

    kernel = partial(_kernel, B=B, P=P, L0=L0, H=H, H2=H2, V=V, K=K)
    vmem = pl.BlockSpec(memory_space=pltpu.MemorySpace.VMEM)
    return pl.pallas_call(
        kernel,
        out_shape=jax.ShapeDtypeStruct((B, V), jnp.float32),
        in_specs=[vmem, vmem, vmem, vmem],
        out_specs=vmem,
    )(x, params["w2"], params["w3"], pk)


# ----------------------------------------------------------------------------
# pure-JAX reference (same math, NCL layout like PyTorch) for verification
# ----------------------------------------------------------------------------
def reference(latent, p):
    x = latent[:, None, :]   # (B, 1, L)  NCL

    def conv(x, w):  # x: (B, Cin, L), w: (K, Cin, Cout)
        K = w.shape[0]
        L_out = x.shape[2] - K + 1
        patches = jnp.stack([x[:, :, k:k + L_out] for k in range(K)], axis=0)
        return jnp.einsum("kbct,kcd->bdt", patches, w)

    def bn(y, g, b):  # y: (B, C, L), training-mode BatchNorm1d
        m = y.mean(axis=(0, 2), keepdims=True)
        v = ((y - m) ** 2).mean(axis=(0, 2), keepdims=True)
        return (y - m) / jnp.sqrt(v + EPS) * g[None, :, None] + b[None, :, None]

    def lrelu(y):
        return jnp.where(y > 0, y, NEG_SLOPE * y)

    y = lrelu(bn(conv(x, p["w1"]), p["g2"][0], p["be2"][0]))
    y = lrelu(bn(conv(y, p["w2"]), p["g3"][0], p["be3"][0]))
    y = lrelu(bn(conv(y, p["w3"]), p["g4"][0], p["be4"][0]))
    y = jnp.einsum("bct,cd->bdt", y, p["w4"]) + p["b4"][0][None, :, None]
    V = p["w3"].shape[2]
    y = jnp.max(y[:, :, :V], axis=2)             # maxpool(k=V) + squeeze(-1)
    return jax.nn.sigmoid(y) * 2.0


if __name__ == "__main__":
    # small config: hidden_size=32, latent_dim=16, variables_out=7, batch=2
    B, L = 2, 16
    H, V = 32, 7
    H2 = H // 2

    key = jax.random.PRNGKey(0)
    ks = jax.random.split(key, 6)
    params = dict(
        w1=0.1 * jax.random.normal(ks[0], (4, 1, H), jnp.float32),
        w2=0.1 * jax.random.normal(ks[1], (4, H, H2), jnp.float32),
        w3=0.1 * jax.random.normal(ks[2], (4, H2, V), jnp.float32),
        w4=0.1 * jax.random.normal(ks[3], (V, V), jnp.float32),
        b4=0.1 * jax.random.normal(ks[4], (1, V), jnp.float32),
        g2=jnp.ones((1, H), jnp.float32), be2=jnp.zeros((1, H), jnp.float32),
        g3=jnp.ones((1, H2), jnp.float32), be3=jnp.zeros((1, H2), jnp.float32),
        g4=jnp.ones((1, V), jnp.float32), be4=jnp.zeros((1, V), jnp.float32),
    )
    latent = jax.random.normal(ks[5], (B, L), jnp.float32)

    out = cnn_generator(latent, params)
    jax.block_until_ready(out)
    assert out.shape == (B, V)

    ref = reference(latent, params)
    np.testing.assert_allclose(np.asarray(out), np.asarray(ref),
                               rtol=1e-4, atol=1e-5)
    print("KERNEL_OK")
</pallas_src>

<mosaic_0001>
module attributes {stable_mosaic.version = 11 : i64} {
  func.func @_kernel(%arg0: memref<32x1xf32, #tpu.memory_space<vmem>>, %arg1: memref<4x32x16xf32, #tpu.memory_space<vmem>>, %arg2: memref<4x16x7xf32, #tpu.memory_space<vmem>>, %arg3: memref<24x128xf32, #tpu.memory_space<vmem>>, %arg4: memref<2x7xf32, #tpu.memory_space<vmem>>) attributes {dimension_semantics = [], scalar_prefetch = 0 : i64, scratch_operands = 0 : i64, tpu.core_type = #tpu.core_type<tc>} {
    %0 = tpu.iota {dimensions = array<i32: 0>} : vector<32x1xi32>
    %c16_i32 = arith.constant 16 : i32
    %c0_i32 = arith.constant 0 : i32
    %1 = arith.cmpi eq, %c16_i32, %c0_i32 : i32
    %c1_i32 = arith.constant 1 : i32
    %2 = arith.select %1, %c1_i32, %c16_i32 : i32
    %3 = vector.broadcast %2 : i32 to vector<32x1xi32>
    %4 = arith.remsi %0, %3 : vector<32x1xi32>
    %c0_i32_0 = arith.constant 0 : i32
    %5 = vector.broadcast %c0_i32_0 : i32 to vector<32x1xi32>
    %6 = arith.cmpi ne, %4, %5 : vector<32x1xi32>
    %c0_i32_1 = arith.constant 0 : i32
    %7 = vector.broadcast %c0_i32_1 : i32 to vector<32x1xi32>
    %8 = arith.cmpi slt, %4, %7 : vector<32x1xi32>
    %c0_i32_2 = arith.constant 0 : i32
    %9 = arith.cmpi slt, %2, %c0_i32_2 : i32
    %10 = vector.broadcast %9 : i1 to vector<32x1xi1>
    %11 = vector.broadcast %10 : vector<32x1xi1> to vector<32x1xi1>
    %12 = arith.xori %8, %11 : vector<32x1xi1>
    %13 = arith.andi %12, %6 : vector<32x1xi1>
    %14 = vector.broadcast %2 : i32 to vector<32x1xi32>
    %15 = arith.addi %4, %14 : vector<32x1xi32>
    %16 = arith.select %13, %15, %4 : vector<32x1xi1>, vector<32x1xi32>
    %c0 = arith.constant 0 : index
    %c0_3 = arith.constant 0 : index
    %17 = vector.load %arg3[%c0, %c0_3] : memref<24x128xf32, #tpu.memory_space<vmem>>, vector<24x128xf32>
    %18 = vector.extract_strided_slice %17 {offsets = [0, 0], sizes = [1, 32], strides = [1, 1]} : vector<24x128xf32> to vector<1x32xf32>
    %19 = vector.extract_strided_slice %17 {offsets = [1, 0], sizes = [1, 32], strides = [1, 1]} : vector<24x128xf32> to vector<1x32xf32>
    %20 = vector.extract_strided_slice %17 {offsets = [2, 0], sizes = [1, 16], strides = [1, 1]} : vector<24x128xf32> to vector<1x16xf32>
    %21 = vector.extract_strided_slice %17 {offsets = [3, 0], sizes = [1, 16], strides = [1, 1]} : vector<24x128xf32> to vector<1x16xf32>
    %22 = vector.extract_strided_slice %17 {offsets = [4, 0], sizes = [1, 7], strides = [1, 1]} : vector<24x128xf32> to vector<1x7xf32>
    %23 = vector.extract_strided_slice %17 {offsets = [5, 0], sizes = [1, 7], strides = [1, 1]} : vector<24x128xf32> to vector<1x7xf32>
    %24 = vector.extract_strided_slice %17 {offsets = [6, 0], sizes = [1, 7], strides = [1, 1]} : vector<24x128xf32> to vector<1x7xf32>
    %25 = vector.extract_strided_slice %17 {offsets = [8, 0], sizes = [4, 32], strides = [1, 1]} : vector<24x128xf32> to vector<4x32xf32>
    %26 = vector.extract_strided_slice %17 {offsets = [16, 0], sizes = [7, 7], strides = [1, 1]} : vector<24x128xf32> to vector<7x7xf32>
    %c0_4 = arith.constant 0 : index
    %c0_5 = arith.constant 0 : index
    %27 = vector.load %arg0[%c0_4, %c0_5] : memref<32x1xf32, #tpu.memory_space<vmem>>, vector<32x1xf32>
    %cst = arith.constant 0.000000e+00 : f32
    %28 = vector.broadcast %cst : f32 to vector<8x1xf32>
    %29 = tpu.concatenate %27, %28 in 0 : vector<32x1xf32>, vector<8x1xf32> -> vector<40x1xf32>
    %30 = vector.extract_strided_slice %29 {offsets = [0, 0], sizes = [32, 1], strides = [1, 1]} : vector<40x1xf32> to vector<32x1xf32>
    %31 = vector.extract_strided_slice %25 {offsets = [0, 0], sizes = [1, 32], strides = [1, 1]} : vector<4x32xf32> to vector<1x32xf32>
    %32 = vector.broadcast %30 : vector<32x1xf32> to vector<32x32xf32>
    %33 = vector.broadcast %31 : vector<1x32xf32> to vector<32x32xf32>
    %34 = arith.mulf %32, %33 : vector<32x32xf32>
    %35 = vector.extract_strided_slice %29 {offsets = [1, 0], sizes = [32, 1], strides = [1, 1]} : vector<40x1xf32> to vector<32x1xf32>
    %36 = vector.extract_strided_slice %25 {offsets = [1, 0], sizes = [1, 32], strides = [1, 1]} : vector<4x32xf32> to vector<1x32xf32>
    %37 = vector.broadcast %35 : vector<32x1xf32> to vector<32x32xf32>
    %38 = vector.broadcast %36 : vector<1x32xf32> to vector<32x32xf32>
    %39 = arith.mulf %37, %38 : vector<32x32xf32>
    %40 = arith.addf %34, %39 : vector<32x32xf32>
    %41 = vector.extract_strided_slice %29 {offsets = [2, 0], sizes = [32, 1], strides = [1, 1]} : vector<40x1xf32> to vector<32x1xf32>
    %42 = vector.extract_strided_slice %25 {offsets = [2, 0], sizes = [1, 32], strides = [1, 1]} : vector<4x32xf32> to vector<1x32xf32>
    %43 = vector.broadcast %41 : vector<32x1xf32> to vector<32x32xf32>
    %44 = vector.broadcast %42 : vector<1x32xf32> to vector<32x32xf32>
    %45 = arith.mulf %43, %44 : vector<32x32xf32>
    %46 = arith.addf %40, %45 : vector<32x32xf32>
    %47 = vector.extract_strided_slice %29 {offsets = [3, 0], sizes = [32, 1], strides = [1, 1]} : vector<40x1xf32> to vector<32x1xf32>
    %48 = vector.extract_strided_slice %25 {offsets = [3, 0], sizes = [1, 32], strides = [1, 1]} : vector<4x32xf32> to vector<1x32xf32>
    %49 = vector.broadcast %47 : vector<32x1xf32> to vector<32x32xf32>
    %50 = vector.broadcast %48 : vector<1x32xf32> to vector<32x32xf32>
    %51 = arith.mulf %49, %50 : vector<32x32xf32>
    %52 = arith.addf %46, %51 : vector<32x32xf32>
    %c13_i32 = arith.constant 13 : i32
    %53 = vector.broadcast %c13_i32 : i32 to vector<32x1xi32>
    %54 = arith.cmpi slt, %16, %53 : vector<32x1xi32>
    %cst_6 = arith.constant 0.000000e+00 : f32
    %55 = vector.shape_cast %54 : vector<32x1xi1> to vector<32x1xi1>
    %56 = vector.broadcast %55 : vector<32x1xi1> to vector<32x32xi1>
    %57 = vector.broadcast %cst_6 : f32 to vector<32x32xf32>
    %58 = arith.select %56, %52, %57 : vector<32x32xi1>, vector<32x32xf32>
    %cst_7 = arith.constant dense<0.000000e+00> : vector<32xf32>
    %59 = vector.multi_reduction <add>, %58, %cst_7 [0] : vector<32x32xf32> to vector<32xf32>
    %60 = vector.shape_cast %59 : vector<32xf32> to vector<1x32xf32>
    %61 = arith.mulf %58, %58 : vector<32x32xf32>
    %cst_8 = arith.constant dense<0.000000e+00> : vector<32xf32>
    %62 = vector.multi_reduction <add>, %61, %cst_8 [0] : vector<32x32xf32> to vector<32xf32>
    %63 = vector.shape_cast %62 : vector<32xf32> to vector<1x32xf32>
    %cst_9 = arith.constant 0.0384615399 : f32
    %64 = vector.broadcast %cst_9 : f32 to vector<1x32xf32>
    %65 = arith.mulf %60, %64 : vector<1x32xf32>
    %cst_10 = arith.constant 0.0384615399 : f32
    %66 = vector.broadcast %cst_10 : f32 to vector<1x32xf32>
    %67 = arith.mulf %63, %66 : vector<1x32xf32>
    %68 = arith.mulf %65, %65 : vector<1x32xf32>
    %69 = arith.subf %67, %68 : vector<1x32xf32>
    %cst_11 = arith.constant 9.99999974E-6 : f32
    %70 = vector.broadcast %cst_11 : f32 to vector<1x32xf32>
    %71 = arith.addf %69, %70 : vector<1x32xf32>
    %72 = math.rsqrt %71 : vector<1x32xf32>
    %73 = arith.mulf %18, %72 : vector<1x32xf32>
    %74 = arith.mulf %65, %73 : vector<1x32xf32>
    %75 = arith.subf %19, %74 : vector<1x32xf32>
    %76 = vector.broadcast %73 : vector<1x32xf32> to vector<32x32xf32>
    %77 = arith.mulf %58, %76 : vector<32x32xf32>
    %78 = vector.broadcast %75 : vector<1x32xf32> to vector<32x32xf32>
    %79 = arith.addf %77, %78 : vector<32x32xf32>
    %cst_12 = arith.constant 0.00999999977 : f32
    %80 = vector.broadcast %cst_12 : f32 to vector<32x32xf32>
    %81 = arith.mulf %80, %79 : vector<32x32xf32>
    %82 = arith.maximumf %79, %81 : vector<32x32xf32>
    %cst_13 = arith.constant 0.000000e+00 : f32
    %83 = vector.broadcast %cst_13 : f32 to vector<8x32xf32>
    %84 = tpu.concatenate %82, %83 in 0 : vector<32x32xf32>, vector<8x32xf32> -> vector<40x32xf32>
    %85 = vector.extract_strided_slice %84 {offsets = [0, 0], sizes = [32, 32], strides = [1, 1]} : vector<40x32xf32> to vector<32x32xf32>
    %c0_14 = arith.constant 0 : index
    %c0_15 = arith.constant 0 : index
    %c0_16 = arith.constant 0 : index
    %86 = vector.load %arg1[%c0_14, %c0_15, %c0_16] : memref<4x32x16xf32, #tpu.memory_space<vmem>>, vector<1x32x16xf32>
    %87 = vector.shape_cast %86 : vector<1x32x16xf32> to vector<32x16xf32>
    %cst_17 = arith.constant dense<0.000000e+00> : vector<32x16xf32>
    %88 = tpu.matmul %85, %87, %cst_17 {dimension_numbers = #tpu.dot_dimension_numbers<[1], [0], [0], [1], [0, 0, 1, 1], [], []>} : vector<32x32xf32>, vector<32x16xf32>, vector<32x16xf32> -> vector<32x16xf32>
    %89 = vector.extract_strided_slice %84 {offsets = [1, 0], sizes = [32, 32], strides = [1, 1]} : vector<40x32xf32> to vector<32x32xf32>
    %c1 = arith.constant 1 : index
    %c0_18 = arith.constant 0 : index
    %c0_19 = arith.constant 0 : index
    %90 = vector.load %arg1[%c1, %c0_18, %c0_19] : memref<4x32x16xf32, #tpu.memory_space<vmem>>, vector<1x32x16xf32>
    %91 = vector.shape_cast %90 : vector<1x32x16xf32> to vector<32x16xf32>
    %cst_20 = arith.constant dense<0.000000e+00> : vector<32x16xf32>
    %92 = tpu.matmul %89, %91, %cst_20 {dimension_numbers = #tpu.dot_dimension_numbers<[1], [0], [0], [1], [0, 0, 1, 1], [], []>} : vector<32x32xf32>, vector<32x16xf32>, vector<32x16xf32> -> vector<32x16xf32>
    %93 = arith.addf %88, %92 : vector<32x16xf32>
    %94 = vector.extract_strided_slice %84 {offsets = [2, 0], sizes = [32, 32], strides = [1, 1]} : vector<40x32xf32> to vector<32x32xf32>
    %c2 = arith.constant 2 : index
    %c0_21 = arith.constant 0 : index
    %c0_22 = arith.constant 0 : index
    %95 = vector.load %arg1[%c2, %c0_21, %c0_22] : memref<4x32x16xf32, #tpu.memory_space<vmem>>, vector<1x32x16xf32>
    %96 = vector.shape_cast %95 : vector<1x32x16xf32> to vector<32x16xf32>
    %cst_23 = arith.constant dense<0.000000e+00> : vector<32x16xf32>
    %97 = tpu.matmul %94, %96, %cst_23 {dimension_numbers = #tpu.dot_dimension_numbers<[1], [0], [0], [1], [0, 0, 1, 1], [], []>} : vector<32x32xf32>, vector<32x16xf32>, vector<32x16xf32> -> vector<32x16xf32>
    %98 = arith.addf %93, %97 : vector<32x16xf32>
    %99 = vector.extract_strided_slice %84 {offsets = [3, 0], sizes = [32, 32], strides = [1, 1]} : vector<40x32xf32> to vector<32x32xf32>
    %c3 = arith.constant 3 : index
    %c0_24 = arith.constant 0 : index
    %c0_25 = arith.constant 0 : index
    %100 = vector.load %arg1[%c3, %c0_24, %c0_25] : memref<4x32x16xf32, #tpu.memory_space<vmem>>, vector<1x32x16xf32>
    %101 = vector.shape_cast %100 : vector<1x32x16xf32> to vector<32x16xf32>
    %cst_26 = arith.constant dense<0.000000e+00> : vector<32x16xf32>
    %102 = tpu.matmul %99, %101, %cst_26 {dimension_numbers = #tpu.dot_dimension_numbers<[1], [0], [0], [1], [0, 0, 1, 1], [], []>} : vector<32x32xf32>, vector<32x16xf32>, vector<32x16xf32> -> vector<32x16xf32>
    %103 = arith.addf %98, %102 : vector<32x16xf32>
    %c10_i32 = arith.constant 10 : i32
    %104 = vector.broadcast %c10_i32 : i32 to vector<32x1xi32>
    %105 = arith.cmpi slt, %16, %104 : vector<32x1xi32>
    %cst_27 = arith.constant 0.000000e+00 : f32
    %106 = vector.shape_cast %105 : vector<32x1xi1> to vector<32x1xi1>
    %107 = vector.broadcast %106 : vector<32x1xi1> to vector<32x16xi1>
    %108 = vector.broadcast %cst_27 : f32 to vector<32x16xf32>
    %109 = arith.select %107, %103, %108 : vector<32x16xi1>, vector<32x16xf32>
    %cst_28 = arith.constant dense<0.000000e+00> : vector<16xf32>
    %110 = vector.multi_reduction <add>, %109, %cst_28 [0] : vector<32x16xf32> to vector<16xf32>
    %111 = vector.shape_cast %110 : vector<16xf32> to vector<1x16xf32>
    %112 = arith.mulf %109, %109 : vector<32x16xf32>
    %cst_29 = arith.constant dense<0.000000e+00> : vector<16xf32>
    %113 = vector.multi_reduction <add>, %112, %cst_29 [0] : vector<32x16xf32> to vector<16xf32>
    %114 = vector.shape_cast %113 : vector<16xf32> to vector<1x16xf32>
    %cst_30 = arith.constant 5.000000e-02 : f32
    %115 = vector.broadcast %cst_30 : f32 to vector<1x16xf32>
    %116 = arith.mulf %111, %115 : vector<1x16xf32>
    %cst_31 = arith.constant 5.000000e-02 : f32
    %117 = vector.broadcast %cst_31 : f32 to vector<1x16xf32>
    %118 = arith.mulf %114, %117 : vector<1x16xf32>
    %119 = arith.mulf %116, %116 : vector<1x16xf32>
    %120 = arith.subf %118, %119 : vector<1x16xf32>
    %cst_32 = arith.constant 9.99999974E-6 : f32
    %121 = vector.broadcast %cst_32 : f32 to vector<1x16xf32>
    %122 = arith.addf %120, %121 : vector<1x16xf32>
    %123 = math.rsqrt %122 : vector<1x16xf32>
    %124 = arith.mulf %20, %123 : vector<1x16xf32>
    %125 = arith.mulf %116, %124 : vector<1x16xf32>
    %126 = arith.subf %21, %125 : vector<1x16xf32>
    %127 = vector.broadcast %124 : vector<1x16xf32> to vector<32x16xf32>
    %128 = arith.mulf %109, %127 : vector<32x16xf32>
    %129 = vector.broadcast %126 : vector<1x16xf32> to vector<32x16xf32>
    %130 = arith.addf %128, %129 : vector<32x16xf32>
    %cst_33 = arith.constant 0.00999999977 : f32
    %131 = vector.broadcast %cst_33 : f32 to vector<32x16xf32>
    %132 = arith.mulf %131, %130 : vector<32x16xf32>
    %133 = arith.maximumf %130, %132 : vector<32x16xf32>
    %cst_34 = arith.constant 0.000000e+00 : f32
    %134 = vector.broadcast %cst_34 : f32 to vector<8x16xf32>
    %135 = tpu.concatenate %133, %134 in 0 : vector<32x16xf32>, vector<8x16xf32> -> vector<40x16xf32>
    %136 = vector.extract_strided_slice %135 {offsets = [0, 0], sizes = [32, 16], strides = [1, 1]} : vector<40x16xf32> to vector<32x16xf32>
    %c0_35 = arith.constant 0 : index
    %c0_36 = arith.constant 0 : index
    %c0_37 = arith.constant 0 : index
    %137 = vector.load %arg2[%c0_35, %c0_36, %c0_37] : memref<4x16x7xf32, #tpu.memory_space<vmem>>, vector<1x16x7xf32>
    %138 = vector.shape_cast %137 : vector<1x16x7xf32> to vector<16x7xf32>
    %cst_38 = arith.constant dense<0.000000e+00> : vector<32x7xf32>
    %139 = tpu.matmul %136, %138, %cst_38 {dimension_numbers = #tpu.dot_dimension_numbers<[1], [0], [0], [1], [0, 0, 1, 1], [], []>} : vector<32x16xf32>, vector<16x7xf32>, vector<32x7xf32> -> vector<32x7xf32>
    %140 = vector.extract_strided_slice %135 {offsets = [1, 0], sizes = [32, 16], strides = [1, 1]} : vector<40x16xf32> to vector<32x16xf32>
    %c1_39 = arith.constant 1 : index
    %c0_40 = arith.constant 0 : index
    %c0_41 = arith.constant 0 : index
    %141 = vector.load %arg2[%c1_39, %c0_40, %c0_41] : memref<4x16x7xf32, #tpu.memory_space<vmem>>, vector<1x16x7xf32>
    %142 = vector.shape_cast %141 : vector<1x16x7xf32> to vector<16x7xf32>
    %cst_42 = arith.constant dense<0.000000e+00> : vector<32x7xf32>
    %143 = tpu.matmul %140, %142, %cst_42 {dimension_numbers = #tpu.dot_dimension_numbers<[1], [0], [0], [1], [0, 0, 1, 1], [], []>} : vector<32x16xf32>, vector<16x7xf32>, vector<32x7xf32> -> vector<32x7xf32>
    %144 = arith.addf %139, %143 : vector<32x7xf32>
    %145 = vector.extract_strided_slice %135 {offsets = [2, 0], sizes = [32, 16], strides = [1, 1]} : vector<40x16xf32> to vector<32x16xf32>
    %c2_43 = arith.constant 2 : index
    %c0_44 = arith.constant 0 : index
    %c0_45 = arith.constant 0 : index
    %146 = vector.load %arg2[%c2_43, %c0_44, %c0_45] : memref<4x16x7xf32, #tpu.memory_space<vmem>>, vector<1x16x7xf32>
    %147 = vector.shape_cast %146 : vector<1x16x7xf32> to vector<16x7xf32>
    %cst_46 = arith.constant dense<0.000000e+00> : vector<32x7xf32>
    %148 = tpu.matmul %145, %147, %cst_46 {dimension_numbers = #tpu.dot_dimension_numbers<[1], [0], [0], [1], [0, 0, 1, 1], [], []>} : vector<32x16xf32>, vector<16x7xf32>, vector<32x7xf32> -> vector<32x7xf32>
    %149 = arith.addf %144, %148 : vector<32x7xf32>
    %150 = vector.extract_strided_slice %135 {offsets = [3, 0], sizes = [32, 16], strides = [1, 1]} : vector<40x16xf32> to vector<32x16xf32>
    %c3_47 = arith.constant 3 : index
    %c0_48 = arith.constant 0 : index
    %c0_49 = arith.constant 0 : index
    %151 = vector.load %arg2[%c3_47, %c0_48, %c0_49] : memref<4x16x7xf32, #tpu.memory_space<vmem>>, vector<1x16x7xf32>
    %152 = vector.shape_cast %151 : vector<1x16x7xf32> to vector<16x7xf32>
    %cst_50 = arith.constant dense<0.000000e+00> : vector<32x7xf32>
    %153 = tpu.matmul %150, %152, %cst_50 {dimension_numbers = #tpu.dot_dimension_numbers<[1], [0], [0], [1], [0, 0, 1, 1], [], []>} : vector<32x16xf32>, vector<16x7xf32>, vector<32x7xf32> -> vector<32x7xf32>
    %154 = arith.addf %149, %153 : vector<32x7xf32>
    %c7_i32 = arith.constant 7 : i32
    %155 = vector.broadcast %c7_i32 : i32 to vector<32x1xi32>
    %156 = arith.cmpi slt, %16, %155 : vector<32x1xi32>
    %cst_51 = arith.constant 0.000000e+00 : f32
    %157 = vector.shape_cast %156 : vector<32x1xi1> to vector<32x1xi1>
    %158 = vector.broadcast %157 : vector<32x1xi1> to vector<32x7xi1>
    %159 = vector.broadcast %cst_51 : f32 to vector<32x7xf32>
    %160 = arith.select %158, %154, %159 : vector<32x7xi1>, vector<32x7xf32>
    %cst_52 = arith.constant dense<0.000000e+00> : vector<7xf32>
    %161 = vector.multi_reduction <add>, %160, %cst_52 [0] : vector<32x7xf32> to vector<7xf32>
    %162 = vector.shape_cast %161 : vector<7xf32> to vector<1x7xf32>
    %163 = arith.mulf %160, %160 : vector<32x7xf32>
    %cst_53 = arith.constant dense<0.000000e+00> : vector<7xf32>
    %164 = vector.multi_reduction <add>, %163, %cst_53 [0] : vector<32x7xf32> to vector<7xf32>
    %165 = vector.shape_cast %164 : vector<7xf32> to vector<1x7xf32>
    %cst_54 = arith.constant 0.0714285746 : f32
    %166 = vector.broadcast %cst_54 : f32 to vector<1x7xf32>
    %167 = arith.mulf %162, %166 : vector<1x7xf32>
    %cst_55 = arith.constant 0.0714285746 : f32
    %168 = vector.broadcast %cst_55 : f32 to vector<1x7xf32>
    %169 = arith.mulf %165, %168 : vector<1x7xf32>
    %170 = arith.mulf %167, %167 : vector<1x7xf32>
    %171 = arith.subf %169, %170 : vector<1x7xf32>
    %cst_56 = arith.constant 9.99999974E-6 : f32
    %172 = vector.broadcast %cst_56 : f32 to vector<1x7xf32>
    %173 = arith.addf %171, %172 : vector<1x7xf32>
    %174 = math.rsqrt %173 : vector<1x7xf32>
    %175 = arith.mulf %22, %174 : vector<1x7xf32>
    %176 = arith.mulf %167, %175 : vector<1x7xf32>
    %177 = arith.subf %23, %176 : vector<1x7xf32>
    %178 = vector.broadcast %175 : vector<1x7xf32> to vector<32x7xf32>
    %179 = arith.mulf %160, %178 : vector<32x7xf32>
    %180 = vector.broadcast %177 : vector<1x7xf32> to vector<32x7xf32>
    %181 = arith.addf %179, %180 : vector<32x7xf32>
    %cst_57 = arith.constant 0.00999999977 : f32
    %182 = vector.broadcast %cst_57 : f32 to vector<32x7xf32>
    %183 = arith.mulf %182, %181 : vector<32x7xf32>
    %184 = arith.maximumf %181, %183 : vector<32x7xf32>
    %cst_58 = arith.constant dense<0.000000e+00> : vector<32x7xf32>
    %185 = tpu.matmul %184, %26, %cst_58 {dimension_numbers = #tpu.dot_dimension_numbers<[1], [0], [0], [1], [0, 0, 1, 1], [], []>} : vector<32x7xf32>, vector<7x7xf32>, vector<32x7xf32> -> vector<32x7xf32>
    %186 = vector.broadcast %24 : vector<1x7xf32> to vector<32x7xf32>
    %187 = arith.addf %185, %186 : vector<32x7xf32>
    %188 = vector.extract_strided_slice %187 {offsets = [0, 0], sizes = [7, 7], strides = [1, 1]} : vector<32x7xf32> to vector<7x7xf32>
    %cst_59 = arith.constant dense<0xFF800000> : vector<7xf32>
    %189 = vector.multi_reduction <maximumf>, %188, %cst_59 [0] : vector<7x7xf32> to vector<7xf32>
    %190 = vector.shape_cast %189 : vector<7xf32> to vector<1x7xf32>
    %191 = vector.extract_strided_slice %187 {offsets = [16, 0], sizes = [7, 7], strides = [1, 1]} : vector<32x7xf32> to vector<7x7xf32>
    %cst_60 = arith.constant dense<0xFF800000> : vector<7xf32>
    %192 = vector.multi_reduction <maximumf>, %191, %cst_60 [0] : vector<7x7xf32> to vector<7xf32>
    %193 = vector.shape_cast %192 : vector<7xf32> to vector<1x7xf32>
    %194 = tpu.concatenate %190, %193 in 0 : vector<1x7xf32>, vector<1x7xf32> -> vector<2x7xf32>
    %195 = arith.negf %194 : vector<2x7xf32>
    %196 = math.exp %195 : vector<2x7xf32>
    %cst_61 = arith.constant 1.000000e+00 : f32
    %197 = vector.broadcast %cst_61 : f32 to vector<2x7xf32>
    %198 = arith.addf %197, %196 : vector<2x7xf32>
    %199 = arith.divf %197, %198 : vector<2x7xf32>
    %cst_62 = arith.constant 2.000000e+00 : f32
    %200 = vector.broadcast %cst_62 : f32 to vector<2x7xf32>
    %201 = arith.mulf %199, %200 : vector<2x7xf32>
    %c0_63 = arith.constant 0 : index
    %c0_64 = arith.constant 0 : index
    %202 = vector.load %arg4[%c0_63, %c0_64] : memref<2x7xf32, #tpu.memory_space<vmem>>, vector<2x7xf32>
    tpu.vector_store %arg4[%c0_63, %c0_64], %201 {strides = array<i32>} : memref<2x7xf32, #tpu.memory_space<vmem>>, vector<2x7xf32>,
    return
  }
}

</mosaic_0001>

<bundles_post_ra>
// kernel: tpu_custom_call.1
= control target key start
LH: loop header
LB: loop body
LE: loop exit
PB: predicated region body
PF: predicated region fallthrough
CT: control target
= control target key end

     0   :  { %v1779_v2 = vmov 0   ;;  %s2114_s0 = inlined_call_operand.vmem [shape: f32[32,1], index: 0, kind: input, shape index: {}]   ;;  %s2115_s1 = inlined_call_operand.vmem [shape: f32[4,32,16], index: 1, kind: input, shape index: {}]   ;;  %s2116_s2 = inlined_call_operand.vmem [shape: f32[4,16,7], index: 2, kind: input, shape index: {}]   ;;  %s2117_s3 = inlined_call_operand.vmem [shape: f32[24,128], index: 3, kind: input, shape index: {}]   ;;  %s2118_s4 = inlined_call_operand.hbm [shape: f32[2,7], index: 4, kind: output, shape index: {}]  }
   0x1   :  { %v75_v0 = vld [vmem:[%s2114_s0 + $0x8] sm:$0xff]  ;;  %v74_v1 = vld [vmem:[%s2114_s0] sm:$0xff]  ;;  %1744 = vset.pattern.permute.xlu1 %v1779_v2  ;;  %1743 = vset.pattern.permute.xlu0 %v1779_v2 }
   0x2   :  { %9 = vsyncpa [#allocation3], 0  ;;  %85 = vperm.xlu0 %1743, %v75_v0   ;;  %80 = vperm.xlu1 %1744, %v74_v1   ;;  %v76_v3 = vld [vmem:[%s2114_s0 + $0x10] sm:$0xff]  ;;  %v77_v4 = vld [vmem:[%s2114_s0 + $0x18] sm:$0xff]  ;;  %v18_v14 = vlaneseq  ;;  %vm125_vm0 = vcmask 1046528   ;;  %vm157_vm1 = vcmask 1045504  }
   0x3   :  { %v1447_v5 = vld [vmem:[%s2115_s1 + $0x20] sm:$0xff]  ;;  %v1448_v6 = vld [vmem:[%s2115_s1 + $0x28] sm:$0xff]  ;;  %v1449_v7 = vld [vmem:[%s2115_s1 + $0x30] sm:$0xff]  ;;  %vm189_vm2 = vcmask 1044480   ;;  %vm223_vm3 = vcmask 261120   ;;  %vm736_vm7 = vcmask 130048  }
   0x4   :  { %v1668_v8 = vpack.c.bf16 %v1448_v6, %v1447_v5  ;;  %v1450_v9 = vld [vmem:[%s2115_s1 + $0x38] sm:$0xff]  ;;  %v290_v11 = vld [vmem:[%s2115_s1] sm:$0xff]  ;;  %v291_v12 = vld [vmem:[%s2115_s1 + $0x8] sm:$0xff]  ;;  %v1840_v15 = vshrl.u32 %v18_v14, 7  ;;  %vm1238_vm11 = vcmask 56320   ;;  %vm1407_vm12 = vcmask 55296  }
   0x5   :  { %v1672_v10 = vpack.c.bf16 %v1450_v9, %v1449_v7  ;;  %v1837_v13 = vpack.c.bf16 %v291_v12, %v290_v11  ;;  %v72_v18 = vld [vmem:[%s2117_s3 + $0x8] sm:$0xff]  ;;  %vm1422_vm13 = vcmask 1040384   ;;  %vm1431_vm14 = vcmask 50176  }
   0x6   :  { %90 = vperm.xlu0 %1743, %v76_v3   ;;  %95 = vperm.xlu1 %1744, %v77_v4   ;;  %v113_v16 = vsub.s32 1, %v1840_v15  ;;  %v145_v17 = vsub.s32 2, %v1840_v15  ;;  %v177_v19 = vsub.s32 3, %v1840_v15  ;;  %v100_v20 = vsub.s32 0, %v1840_v15 }
   0x7   :  { %1669 = vmatprep.subr.bf16.mxu0 %v1668_v8  ;;  %v1860_v31 = vadd.s32 8, %v1840_v15  ;;  %v1866_v45 = vadd.s32 24, %v1840_v15 }
   0x8   :  { %1671 = vmatpush3.bf16.msra.mxu0 %v1668_v8  ;;  %v114_v21 = vrot.slane %v72_v18, %v113_v16  ;;  %v146_v22 = vrot.slane %v72_v18, %v145_v17  ;;  %v178_v23 = vrot.slane %v72_v18, %v177_v19  ;;  %v101_v27 = vrot.slane %v72_v18, %v100_v20 }
   0x9   :  { %1673 = vmatprep.subr.bf16.mxu0 %v1672_v10  ;;  %v34_v54 = vand.u32 15, %v1860_v31  ;;  %v48_v2 = vand.u32 15, %v1866_v45 }
   0xa   :  { %v119_v24 = vmul.f32 0.0, %v114_v21  ;;  %v1855_v25 = vmul.f32 0.0, %v146_v22  ;;  %v1862_v32 = vmul.f32 0.0, %v178_v23 }
   0xb   :  { %vm208_vm4 = vcmp.lt.s32.totalorder %v34_v54, 13  ;;  %vm210_vm5 = vcmp.lt.s32.totalorder %v48_v2, 13  ;;  %vm721_vm6 = vcmp.lt.s32.totalorder %v34_v54, 10  ;;  %vm723_vm8 = vcmp.lt.s32.totalorder %v48_v2, 10 }
   0xc   :  { %1675 = vmatpush3.bf16.msra.mxu0 %v1672_v10  ;;  %v133_v39 = vrot.slane %v119_v24, 1  ;;  %v165_v40 = vrot.slane %v1855_v25, 2  ;;  %v197_v50 = vrot.slane %v1862_v32, 3 }
   0xd   :  { %1677 = vmatprep.subr.bf16.mxu0 %v1837_v13 }
  0x81   :  { %v86_v26 = vpop.permute.xlu0 %85  ;;  %v81_v28 = vpop.permute.xlu1 %80 }
  0x82   :  { %v116_v29 = vmul.f32 %v114_v21, %v86_v26  ;;  %v148_v30 = vmul.f32 %v146_v22, %v86_v26  ;;  %v180_v33 = vmul.f32 %v178_v23, %v86_v26  ;;  %v115_v34 = vmul.f32 %v114_v21, %v81_v28 }
  0x83   :  { %v147_v35 = vmul.f32 %v146_v22, %v81_v28  ;;  %v179_v36 = vmul.f32 %v178_v23, %v81_v28  ;;  %v102_v38 = vmul.f32 %v101_v27, %v81_v28  ;;  %v103_v55 = vmul.f32 %v101_v27, %v86_v26 }
  0x84   :  { %v127_v37 = vrot.slane %v116_v29, 1  ;;  %v159_v41 = vrot.slane %v148_v30, 2  ;;  %v126_v42 = vrot.slane %v115_v34, 1  ;;  %v191_v51 = vrot.slane %v180_v33, 3 }
  0x85   :  { %v158_v43 = vrot.slane %v147_v35, 2  ;;  %v91_v44 = vpop.permute.xlu0 %90  ;;  %v96_v49 = vpop.permute.xlu1 %95  ;;  %v190_v53 = vrot.slane %v179_v36, 3 }
  0x86   :  { %v117_v46 = vmul.f32 %v114_v21, %v91_v44  ;;  %v149_v47 = vmul.f32 %v146_v22, %v91_v44  ;;  %v181_v48 = vmul.f32 %v178_v23, %v91_v44  ;;  %v128_v52 = vsel %vm125_vm0, %v126_v42, %v127_v37 }
  0x87   :  { %v139_v56 = vadd.f32 %v128_v52, %v102_v38  ;;  %v160_v59 = vsel %vm157_vm1, %v158_v43, %v159_v41  ;;  %v118_v60 = vmul.f32 %v114_v21, %v96_v49  ;;  %v150_v61 = vmul.f32 %v146_v22, %v96_v49 }
  0x88   :  { %v129_v57 = vrot.slane %v117_v46, 1  ;;  %v161_v58 = vrot.slane %v149_v47, 2  ;;  %v182_v62 = vmul.f32 %v178_v23, %v96_v49  ;;  %v193_v1 = vrot.slane %v181_v48, 3 }
  0x89   :  { %v171_v63 = vadd.f32 %v160_v59, %v139_v56  ;;  %v192_v3 = vsel %vm189_vm2, %v190_v53, %v191_v51  ;;  %v131_v5 = vrot.slane %v118_v60, 1  ;;  %v163_v6 = vrot.slane %v150_v61, 2 }
  0x8a   :  { %v130_v0 = vsel %vm125_vm0, %v127_v37, %v129_v57  ;;  %v104_v8 = vmul.f32 %v101_v27, %v91_v44  ;;  %v162_v9 = vsel %vm157_vm1, %v159_v41, %v161_v58  ;;  %v105_v10 = vmul.f32 %v101_v27, %v96_v49 }
  0x8b   :  { %v140_v4 = vadd.f32 %v130_v0, %v103_v55  ;;  %v1875_v7 = vadd.f32 %v192_v3, %v171_v63  ;;  %v132_v12 = vsel %vm125_vm0, %v129_v57, %v131_v5  ;;  %v134_v14 = vsel %vm125_vm0, %v131_v5, %v133_v39 }
  0x8c   :  { %v195_v18 = vrot.slane %v182_v62, 3  ;;  %v194_v21 = vsel %vm189_vm2, %v191_v51, %v193_v1  ;;  %v141_v22 = vadd.f32 %v132_v12, %v104_v8  ;;  %v142_v23 = vadd.f32 %v134_v14, %v105_v10 }
  0x8d   :  { %v172_v11 = vadd.f32 %v162_v9, %v140_v4  ;;  %v237_v24 = vmul.f32 %v1875_v7, %v1875_v7  ;;  %v164_v26 = vsel %vm157_vm1, %v161_v58, %v163_v6  ;;  %v166_v27 = vsel %vm157_vm1, %v163_v6, %v165_v40 }
  0x8e   :  { %v173_v28 = vadd.f32 %v164_v26, %v141_v22  ;;  %v174_v29 = vadd.f32 %v166_v27, %v142_v23  ;;  %v224_v32 = vsel %vm223_vm3, %v1875_v7, 0.0  ;;  %v196_v33 = vsel %vm189_vm2, %v193_v1, %v195_v18 }
  0x8f   :  { %v204_v25 = vadd.f32 %v194_v21, %v172_v11  ;;  %v198_v34 = vsel %vm189_vm2, %v195_v18, %v197_v50  ;;  %v241_v40 = vsel %vm223_vm3, %v237_v24, 0.0  ;;  %v1903_v11 = vld [vmem:[%s2117_s3] sm:$0xff] }
  0x90   :  { %v205_v37 = vadd.f32 %v196_v33, %v173_v28  ;;  %v206_v38 = vadd.f32 %v198_v34, %v174_v29 }
  0x91   :  { %v220_v30 = vsel %vm208_vm4, %v204_v25, 0.0 }
  0x92   :  { %v225_v35 = vsel %vm223_vm3, %v220_v30, 0.0  ;;  %v238_v36 = vmul.f32 %v220_v30, %v220_v30  ;;  %v222_v42 = vsel %vm210_vm5, %v206_v38, 0.0  ;;  %v227_v43 = vsel %vm223_vm3, %v205_v37, 0.0 }
  0x93   :  { %v226_v39 = vadd.f32 %v225_v35, %v224_v32  ;;  %v239_v44 = vmul.f32 %v205_v37, %v205_v37  ;;  %v240_v48 = vmul.f32 %v222_v42, %v222_v42  ;;  %v229_v49 = vsel %vm223_vm3, %v222_v42, 0.0 }
  0x94   :  { %v242_v41 = vsel %vm223_vm3, %v238_v36, 0.0 }
  0x95   :  { %v243_v46 = vadd.f32 %v242_v41, %v241_v40  ;;  %v228_v47 = vadd.f32 %v227_v43, %v226_v39  ;;  %v244_v50 = vsel %vm223_vm3, %v239_v44, 0.0  ;;  %v246_v53 = vsel %vm223_vm3, %v240_v48, 0.0 }
  0x97   :  { %v230_v51 = vadd.f32 %v229_v49, %v228_v47  ;;  %v245_v52 = vadd.f32 %v244_v50, %v243_v46  ;;  %v1780_v49 = vmov 0.0  }
  0x98   :  { %v1933_v50 = vrot.slane %v1780_v49, 1 }
  0x99   :  { %v231_v55 = vrot.slane %v230_v51, 4  ;;  %v247_v56 = vadd.f32 %v246_v53, %v245_v52  ;;  %v1460_v52 = vld [vmem:[%s2115_s1 + $0x48] sm:$0xff] }
  0x9b   :  { %v232_v57 = vadd.f32 %v231_v55, %v230_v51  ;;  %v248_v58 = vrot.slane %v247_v56, 4  ;;  %v1459_v51 = vld [vmem:[%s2115_s1 + $0x40] sm:$0xff] }
  0x9c   :  { %v1684_v55 = vpack.c.bf16 %v1460_v52, %v1459_v51 }
  0x9d   :  { %v233_v59 = vrot.slane %v232_v57, 2  ;;  %v249_v60 = vadd.f32 %v248_v58, %v247_v56  ;;  %v1462_v58 = vld [vmem:[%s2115_s1 + $0x58] sm:$0xff] }
  0x9f   :  { %v234_v61 = vadd.f32 %v233_v59, %v232_v57  ;;  %v250_v62 = vrot.slane %v249_v60, 2  ;;  %v1461_v57 = vld [vmem:[%s2115_s1 + $0x50] sm:$0xff]  ;;  %v1467_v59 = vld [vmem:[%s2115_s1 + $0x60] sm:$0xff] }
  0xa1   :  { %v235_v63 = vrot.slane %v234_v61, 1  ;;  %v251_v0 = vadd.f32 %v250_v62, %v249_v60  ;;  %v1468_v60 = vld [vmem:[%s2115_s1 + $0x68] sm:$0xff] }
  0xa3   :  { %v236_v1 = vadd.f32 %v235_v63, %v234_v61  ;;  %v252_v3 = vrot.slane %v251_v0, 1  ;;  %v1692_v63 = vpack.c.bf16 %v1468_v60, %v1467_v59 }
  0xa5   :  { %v253_v4 = vadd.f32 %v252_v3, %v251_v0  ;;  %v254_v5 = vmul.f32 0.03846154, %v236_v1  ;;  %v1469_v1 = vld [vmem:[%s2115_s1 + $0x70] sm:$0xff]  ;;  %v1470_v3 = vld [vmem:[%s2115_s1 + $0x78] sm:$0xff] }
  0xa7   :  { %v255_v6 = vmul.f32 0.03846154, %v253_v4  ;;  %v256_v8 = vmul.f32 %v254_v5, %v254_v5 }
  0xa9   :  { %v257_v9 = vsub.f32 %v255_v6, %v256_v8  ;;  %v1696_v6 = vpack.c.bf16 %v1470_v3, %v1469_v1 }
  0xab   :  { %v258_v10 = vadd.f32 1e-05, %v257_v9  ;;  %v1981_v9 = vrot.slane %v1780_v49, 2 }
  0xad   :  { %1745 = vrsqrt.f32 %v258_v10 }
  0xb7   :  { %v1746_v12 = vpop.eup %1745 }
  0xb8   :  { %v260_v14 = vmul.f32 %v1746_v12, %v1903_v11 }
  0xba   :  { %v261_v18 = vmul.f32 %v260_v14, %v254_v5  ;;  %v269_v21 = vrot.slane %v260_v14, %v100_v20 }
  0xbc   :  { %v263_v22 = vrot.slane %v261_v18, 7  ;;  %v272_v24 = vmul.f32 %v269_v21, %v205_v37  ;;  %v273_v25 = vmul.f32 %v269_v21, %v222_v42  ;;  %v270_v27 = vmul.f32 %v269_v21, %v1875_v7  ;;  %v293_v7 = vld [vmem:[%s2115_s1 + $0x18] sm:$0xff] }
  0xbd   :  { %v271_v28 = vmul.f32 %v269_v21, %v220_v30 }
  0xbe   :  { %v265_v23 = vsub.f32 %v1903_v11, %v263_v22 }
  0xc0   :  { %v277_v26 = vrot.slane %v265_v23, %v113_v16  ;;  %v292_v16 = vld [vmem:[%s2115_s1 + $0x10] sm:$0xff] }
  0xc1   :  { %v1680_v47 = vpack.c.bf16 %v293_v7, %v292_v16 }
  0xc2   :  { %v280_v29 = vadd.f32 %v277_v26, %v272_v24  ;;  %v281_v32 = vadd.f32 %v277_v26, %v273_v25  ;;  %v278_v33 = vadd.f32 %v277_v26, %v270_v27  ;;  %v279_v34 = vadd.f32 %v277_v26, %v271_v28  ;;  %v1475_v28 = vld [vmem:[%s2116_s2 + $0x10] sm:$0xff] }
  0xc3   :  { %v1996_v25 = vrot.slane %v1780_v49, 3 }
  0xc4   :  { %v285_v35 = vmul.f32 0.01, %v281_v32  ;;  %v282_v36 = vmul.f32 0.01, %v278_v33  ;;  %v283_v38 = vmul.f32 0.01, %v279_v34 }
  0xc5   :  { %v284_v39 = vmul.f32 0.01, %v280_v29 }
  0xc6   :  { %v1912_v20 = vmax.f32 %v278_v33, %v282_v36  ;;  %v1914_v40 = vmax.f32 %v279_v34, %v283_v38  ;;  %v1916_v37 = vmax.f32 %v281_v32, %v285_v35  ;;  %v803_v33 = vld [vmem:[%s2116_s2] sm:$0xff]  ;;  %v804_v34 = vld [vmem:[%s2116_s2 + $0x8] sm:$0xff] }
  0xc7   :  { %v1918_v41 = vmax.f32 %v280_v29, %v284_v39  ;;  %v1476_v29 = vld [vmem:[%s2116_s2 + $0x18] sm:$0xff]  ;;  %v2016_v35 = vpack.c.bf16 %v804_v34, %v803_v33 }
  0xc8   :  { %v303_v30 = vrot.slane %v1912_v20, 1  ;;  %v304_v42 = vrot.slane %v1914_v40, 1  ;;  %v308_v43 = vrot.slane %v1916_v37, 1  ;;  %v503_v61 = vrot.slane %v1912_v20, 2 }
  0xc9   :  { %v306_v44 = vrot.slane %v1918_v41, 1  ;;  %v504_v62 = vrot.slane %v1914_v40, 2  ;;  %v506_v0 = vrot.slane %v1918_v41, 2  ;;  %v508_v5 = vrot.slane %v1916_v37, 2 }
  0xca   :  { %v305_v46 = vsel %vm125_vm0, %v303_v30, %v304_v42  ;;  %v311_v56 = vsel %vm125_vm0, %v308_v43, %v1933_v50  ;;  %v614_v12 = vrot.slane %v1912_v20, 3  ;;  %v615_v14 = vrot.slane %v1914_v40, 3 }
  0xcb   :  { %1572 = vmatprep.mubr.msk.f32.mxu0 %vm223_vm3, %v305_v46  ;;  %v307_v48 = vsel %vm125_vm0, %v304_v42, %v306_v44  ;;  %v309_v53 = vsel %vm125_vm0, %v306_v44, %v308_v43  ;;  %v505_v4 = vsel %vm157_vm1, %v503_v61, %v504_v62  ;;  %v507_v8 = vsel %vm157_vm1, %v504_v62, %v506_v0 }
  0xcc   :  { %1573 = vmatmul.mubr.msk.f32.vlgmr.msra.gmra.mrb[0].mxu0 %vm223_vm3, %v307_v48  ;;  %v509_v10 = vsel %vm157_vm1, %v506_v0, %v508_v5  ;;  %v511_v18 = vsel %vm157_vm1, %v508_v5, %v1981_v9  ;;  %v617_v21 = vrot.slane %v1918_v41, 3  ;;  %v616_v22 = vsel %vm189_vm2, %v614_v12, %v615_v14 }
  0xcd   :  { %1679 = vmatpush3.bf16.msra.mxu0 %v1837_v13  ;;  %1575 = vmatprep.mubr.msk.f32.mxu0 %vm223_vm3, %v309_v53  ;;  %v1688_v13 = vpack.c.bf16 %v1462_v58, %v1461_v57  ;;  %v619_v23 = vrot.slane %v1916_v37, 3  ;;  %v1700_v32 = vpack.c.bf16 %v1476_v29, %v1475_v28 }
  0xce   :  { %1681 = vmatprep.subr.bf16.mxu0 %v1680_v47  ;;  %v618_v24 = vsel %vm189_vm2, %v615_v14, %v617_v21 }
  0xcf   :  { %v620_v26 = vsel %vm189_vm2, %v617_v21, %v619_v23  ;;  %v622_v27 = vsel %vm189_vm2, %v619_v23, %v1996_v25  ;;  %1701 = vmatprep.subr.bf16.mxu1 %v1700_v32 }
  0xd0   :  { %1576 = vmatmul.mubr.msk.f32.gmra.mrb[2].mxu0 %vm223_vm3, %v311_v56  ;;  %1703 = vmatpush3.bf16.msra.mxu1 %v1700_v32 }
  0xd1   :  { %1683 = vmatpush3.bf16.msra.mxu0 %v1680_v47  ;;  %1586 = vmatprep.mubr.msk.f32.mxu0 %vm223_vm3, %v1912_v20 }
  0xd2   :  { %1685 = vmatprep.subr.bf16.mxu0 %v1684_v55  ;;  %1705 = vmatprep.subr.bf16.mxu1 %v2016_v35 }
  0xd4   :  { %1587 = vmatmul.mubr.msk.f32.vlgmr.msra.gmra.mrb[0].mxu0 %vm223_vm3, %v1914_v40 }
  0xd5   :  { %1687 = vmatpush3.bf16.msra.mxu0 %v1684_v55  ;;  %1589 = vmatprep.mubr.msk.f32.mxu0 %vm223_vm3, %v1918_v41 }
  0xd6   :  { %1689 = vmatprep.subr.bf16.mxu0 %v1688_v13 }
  0xd8   :  { %1590 = vmatmul.mubr.msk.f32.gmra.mrb[2].mxu0 %vm223_vm3, %v1916_v37 }
  0xd9   :  { %1691 = vmatpush3.bf16.msra.mxu0 %v1688_v13  ;;  %1600 = vmatprep.mubr.msk.f32.mxu0 %vm223_vm3, %v505_v4 }
  0xda   :  { %1693 = vmatprep.subr.bf16.mxu0 %v1692_v63 }
  0xdc   :  { %1601 = vmatmul.mubr.msk.f32.vlgmr.msra.gmra.mrb[0].mxu0 %vm223_vm3, %v507_v8 }
  0xdd   :  { %1695 = vmatpush3.bf16.msra.mxu0 %v1692_v63  ;;  %1603 = vmatprep.mubr.msk.f32.mxu0 %vm223_vm3, %v509_v10 }
  0xde   :  { %1697 = vmatprep.subr.bf16.mxu0 %v1696_v6 }
  0xe0   :  { %1604 = vmatmul.mubr.msk.f32.gmra.mrb[2].mxu0 %vm223_vm3, %v511_v18 }
  0xe1   :  { %1699 = vmatpush3.bf16.msra.mxu0 %v1696_v6  ;;  %1614 = vmatprep.mubr.msk.f32.mxu0 %vm223_vm3, %v616_v22 }
  0xe4   :  { %1615 = vmatmul.mubr.msk.f32.vlgmr.msra.gmra.mrb[0].mxu0 %vm223_vm3, %v618_v24 }
  0xe5   :  { %1617 = vmatprep.mubr.msk.f32.mxu0 %vm223_vm3, %v620_v26 }
  0xe8   :  { %1618 = vmatmul.mubr.msk.f32.gmra.mrb[2].mxu0 %vm223_vm3, %v622_v27 }
 0x1b7   :  { %v1616_v36 = vpop.f32.mrb[0].mxu0 }
 0x1b8   :  { %v733_v38 = vsel %vm721_vm6, %v1616_v36, 0.0  ;;  %v697_v39 = vpop.f32.mrb[1].mxu0  ;;  %v1485_v36 = vld [vmem:[%s2116_s2 + $0x20] sm:$0xff] }
 0x1b9   :  { %v738_v20 = vsel %vm736_vm7, %v733_v38, 0.0  ;;  %v751_v40 = vmul.f32 %v733_v38, %v733_v38  ;;  %v737_v37 = vsel %vm736_vm7, %v697_v39, 0.0  ;;  %v750_v41 = vmul.f32 %v697_v39, %v697_v39 }
 0x1ba   :  { %v739_v16 = vadd.f32 %v738_v20, %v737_v37 }
 0x1bb   :  { %v755_v7 = vsel %vm736_vm7, %v751_v40, 0.0  ;;  %v754_v30 = vsel %vm736_vm7, %v750_v41, 0.0  ;;  %v1619_v31 = vpop.f32.mrb[2].mxu0 }
 0x1bc   :  { %v756_v54 = vadd.f32 %v755_v7, %v754_v30  ;;  %v735_v42 = vsel %vm723_vm8, %v1619_v31, 0.0  ;;  %v707_v43 = vpop.f32.mrb[3].mxu0 }
 0x1bd   :  { %v753_v44 = vmul.f32 %v735_v42, %v735_v42  ;;  %v740_v46 = vsel %vm736_vm7, %v707_v43, 0.0  ;;  %v752_v45 = vmul.f32 %v707_v43, %v707_v43  ;;  %v742_v47 = vsel %vm736_vm7, %v735_v42, 0.0 }
 0x1be   :  { %v741_v2 = vadd.f32 %v740_v46, %v739_v16 }
 0x1bf   :  { %v757_v48 = vsel %vm736_vm7, %v752_v45, 0.0  ;;  %v759_v52 = vsel %vm736_vm7, %v753_v44, 0.0 }
 0x1c0   :  { %v743_v49 = vadd.f32 %v742_v47, %v741_v2  ;;  %v758_v51 = vadd.f32 %v757_v48, %v756_v54 }
 0x1c2   :  { %v744_v53 = vrot.slane %v743_v49, 4  ;;  %v760_v55 = vadd.f32 %v759_v52, %v758_v51 }
 0x1c4   :  { %v745_v56 = vadd.f32 %v744_v53, %v743_v49  ;;  %v761_v57 = vrot.slane %v760_v55, 4 }
 0x1c6   :  { %v746_v58 = vrot.slane %v745_v56, 2  ;;  %v762_v13 = vadd.f32 %v761_v57, %v760_v55 }
 0x1c8   :  { %v747_v59 = vadd.f32 %v746_v58, %v745_v56  ;;  %v763_v60 = vrot.slane %v762_v13, 2 }
 0x1ca   :  { %v748_v61 = vrot.slane %v747_v59, 1  ;;  %v764_v62 = vadd.f32 %v763_v60, %v762_v13  ;;  %v1491_v60 = vld [vmem:[%s2116_s2 + $0x30] sm:$0xff] }
 0x1cc   :  { %v749_v63 = vadd.f32 %v748_v61, %v747_v59  ;;  %v765_v0 = vrot.slane %v764_v62, 1  ;;  %v1492_v61 = vld [vmem:[%s2116_s2 + $0x38] sm:$0xff] }
 0x1ce   :  { %v766_v1 = vadd.f32 %v765_v0, %v764_v62  ;;  %v767_v3 = vmul.f32 0.05, %v749_v63  ;;  %v73_v0 = vld [vmem:[%s2117_s3 + $0x10] sm:$0xff]  ;;  %s1781_s3 = smov [#allocation2]  }
 0x1cf   :  { %s1439_s21 = sshll.u32 %s1781_s3, 4  ;;  %s1440_s21 = int_to_ptr.vmem [resolvable:$true] %s1439_s21 }
 0x1d0   :  { %v768_v4 = vmul.f32 0.05, %v766_v1  ;;  %v769_v5 = vmul.f32 %v767_v3, %v767_v3  ;;  %v21_v1 = vadd.s32 16, %v1840_v15  ;;  %s1755_s22 = scalar_lea.vmem %s1440_s21, 32  ;;  %p1760_p1 = scmp.lt.s32.totalorder %s1440_s21, %s1440_s21 }
 0x1d1   :  { %p1756_p0 = scmp.ne.s32.totalorder %s1440_s21, %s1755_s22  ;;  %p1761_p2 = scmp.lt.s32.totalorder %s1755_s22, %s1755_s22 }
 0x1d2   :  { %v770_v6 = vsub.f32 %v768_v4, %v769_v5 }
 0x1d3   :  { %p1762_p3 = por %p1761_p2, %p1760_p1 }
 0x1d4   :  { %v771_v8 = vadd.f32 1e-05, %v770_v6 }
 0x1d5   :  { %p1763_p4 = pnand %p1762_p3, %p1756_p0 }
 0x1d6   :  { %1747 = vrsqrt.f32 %v771_v8 }
 0x1e0   :  { %v1748_v10 = vpop.eup %1747 }
 0x1e1   :  { %v773_v12 = vmul.f32 %v1748_v10, %v1903_v11 }
 0x1e3   :  { %v774_v14 = vmul.f32 %v773_v12, %v767_v3  ;;  %v782_v18 = vrot.slane %v773_v12, %v145_v17  ;;  %v1486_v17 = vld [vmem:[%s2116_s2 + $0x28] sm:$0xff]  ;;  %v41_v3 = vand.u32 15, %v21_v1 }
 0x1e4   :  { %v1708_v7 = vpack.c.bf16 %v1486_v17, %v1485_v36 }
 0x1e5   :  { %v776_v21 = vrot.slane %v774_v14, 7  ;;  %v785_v22 = vmul.f32 %v782_v18, %v707_v43  ;;  %v786_v23 = vmul.f32 %v782_v18, %v735_v42  ;;  %v783_v24 = vmul.f32 %v782_v18, %v697_v39 }
 0x1e6   :  { %v784_v26 = vmul.f32 %v782_v18, %v733_v38  ;;  %vm1224_vm10 = vcmp.lt.s32.totalorder %v41_v3, 7 }
 0x1e7   :  { %v778_v27 = vsub.f32 %v1903_v11, %v776_v21 }
 0x1e9   :  { %v790_v28 = vrot.slane %v778_v27, %v177_v19 }
 0x1eb   :  { %v793_v29 = vadd.f32 %v790_v28, %v785_v22  ;;  %v791_v32 = vadd.f32 %v790_v28, %v783_v24  ;;  %v792_v33 = vadd.f32 %v790_v28, %v784_v26  ;;  %v794_v34 = vadd.f32 %v790_v28, %v786_v23 }
 0x1ed   :  { %v797_v20 = vmul.f32 0.01, %v793_v29  ;;  %v795_v39 = vmul.f32 0.01, %v791_v32  ;;  %v796_v38 = vmul.f32 0.01, %v792_v33 }
 0x1ee   :  { %v798_v40 = vmul.f32 0.01, %v794_v34 }
 0x1ef   :  { %v801_v37 = vmax.f32 %v793_v29, %v797_v20  ;;  %v799_v41 = vmax.f32 %v791_v32, %v795_v39  ;;  %v800_v16 = vmax.f32 %v792_v33, %v796_v38 }
 0x1f0   :  { %v802_v19 = vmax.f32 %v794_v34, %v798_v40 }
 0x1f1   :  { %v812_v30 = vrot.slane %v799_v41, 1  ;;  %v813_v31 = vrot.slane %v800_v16, 1  ;;  %v815_v54 = vrot.slane %v801_v37, 1  ;;  %v1009_v42 = vrot.slane %v799_v41, 2 }
 0x1f2   :  { %v817_v43 = vrot.slane %v802_v19, 1  ;;  %v1010_v44 = vrot.slane %v800_v16, 2  ;;  %v1012_v46 = vrot.slane %v801_v37, 2  ;;  %v1014_v45 = vrot.slane %v802_v19, 2 }
 0x1f3   :  { %v814_v2 = vsel %vm125_vm0, %v812_v30, %v813_v31  ;;  %v816_v47 = vsel %vm125_vm0, %v813_v31, %v815_v54  ;;  %v1117_v48 = vrot.slane %v799_v41, 3  ;;  %v1118_v49 = vrot.slane %v800_v16, 3 }
 0x1f4   :  { %1624 = vmatprep.mubr.msk.f32.mxu1 %vm736_vm7, %v814_v2  ;;  %v818_v51 = vsel %vm125_vm0, %v815_v54, %v817_v43  ;;  %v1011_v52 = vsel %vm157_vm1, %v1009_v42, %v1010_v44  ;;  %v1013_v53 = vsel %vm157_vm1, %v1010_v44, %v1012_v46  ;;  %v1015_v55 = vsel %vm157_vm1, %v1012_v46, %v1014_v45 }
 0x1f5   :  { %1625 = vmatmul.mubr.msk.f32.vlgmr.msra.gmra.mrb[0].mxu1 %vm736_vm7, %v816_v47  ;;  %v1119_v56 = vsel %vm189_vm2, %v1117_v48, %v1118_v49  ;;  %v1120_v57 = vrot.slane %v801_v37, 3  ;;  %v1122_v58 = vrot.slane %v802_v19, 3  ;;  %v819_v59 = vsel %vm125_vm0, %v817_v43, %v1933_v50 }
 0x1f6   :  { %1707 = vmatpush3.bf16.msra.mxu1 %v2016_v35  ;;  %1627 = vmatprep.mubr.msk.f32.mxu1 %vm736_vm7, %v818_v51  ;;  %v1712_v35 = vpack.c.bf16 %v1492_v61, %v1491_v60  ;;  %v1016_v50 = vsel %vm157_vm1, %v1014_v45, %v1981_v9  ;;  %v27_v9 = vand.u32 15, %v1840_v15  ;;  %v1283_v30 = vsub.s32 4, %v1840_v15 }
 0x1f7   :  { %1709 = vmatprep.subr.bf16.mxu1 %v1708_v7  ;;  %v1121_v13 = vsel %vm189_vm2, %v1118_v49, %v1120_v57  ;;  %v1123_v62 = vsel %vm189_vm2, %v1120_v57, %v1122_v58  ;;  %v1124_v63 = vsel %vm189_vm2, %v1122_v58, %v1996_v25  ;;  %v1291_v45 = vsub.s32 5, %v1840_v15 }
 0x1f8   :  { %vm1222_vm9 = vcmp.lt.s32.totalorder %v27_v9, 7  ;;  %v1307_v60 = vsub.s32 6, %v1840_v15 }
 0x1f9   :  { %1628 = vmatmul.mubr.msk.f32.gmra.mrb[2].mxu1 %vm736_vm7, %v819_v59 }
 0x1fa   :  { %1634 = vmatprep.mubr.msk.f32.mxu1 %vm736_vm7, %v799_v41  ;;  %v1308_v61 = vrot.slane %v1903_v11, %v1307_v60 }
 0x1fd   :  { %1635 = vmatmul.mubr.msk.f32.vlgmr.msra.gmra.mrb[0].mxu1 %vm736_vm7, %v800_v16 }
 0x1fe   :  { %1711 = vmatpush3.bf16.msra.mxu1 %v1708_v7  ;;  %1637 = vmatprep.mubr.msk.f32.mxu1 %vm736_vm7, %v801_v37 }
 0x1ff   :  { %1713 = vmatprep.subr.bf16.mxu1 %v1712_v35 }
 0x201   :  { %1638 = vmatmul.mubr.msk.f32.gmra.mrb[2].mxu1 %vm736_vm7, %v802_v19 }
 0x202   :  { %1644 = vmatprep.mubr.msk.f32.mxu1 %vm736_vm7, %v1011_v52 }
 0x205   :  { %1645 = vmatmul.mubr.msk.f32.vlgmr.msra.gmra.mrb[0].mxu1 %vm736_vm7, %v1013_v53 }
 0x206   :  { %1715 = vmatpush3.bf16.msra.mxu1 %v1712_v35  ;;  %1647 = vmatprep.mubr.msk.f32.mxu1 %vm736_vm7, %v1015_v55 }
 0x207   :  { %1660 = vmatprep.subr.msk.mxu1 %vm125_vm0, %v73_v0 }
 0x209   :  { %1648 = vmatmul.mubr.msk.f32.gmra.mrb[2].mxu1 %vm736_vm7, %v1016_v50 }
 0x20a   :  { %1654 = vmatprep.mubr.msk.f32.mxu1 %vm736_vm7, %v1119_v56 }
 0x20d   :  { %1655 = vmatmul.mubr.msk.f32.vlgmr.msra.gmra.mrb[0].mxu1 %vm736_vm7, %v1121_v13 }
 0x20e   :  { %1657 = vmatprep.mubr.msk.f32.mxu1 %vm736_vm7, %v1123_v62  ;;  %1661 = vmatpush3.msk.msra.mxu1 %vm125_vm0, %v73_v0 }
 0x211   :  { %1658 = vmatmul.mubr.msk.f32.gmra.mrb[2].mxu1 %vm736_vm7, %v1124_v63 }
 0x2e0   :  { %v1656_v4 = vpop.f32.mrb[0].mxu1 }
 0x2e1   :  { %v1199_v5 = vpop.f32.mrb[1].mxu1 }
 0x2e2   :  { %v1234_v6 = vsel %vm1222_vm9, %v1199_v5, 0.0 }
 0x2e3   :  { %v1252_v8 = vmul.f32 %v1234_v6, %v1234_v6  ;;  %v1239_v14 = vsel %vm1238_vm11, %v1234_v6, 0.0 }
 0x2e4   :  { %v1659_v25 = vpop.f32.mrb[2].mxu1 }
 0x2e5   :  { %v1209_v10 = vpop.f32.mrb[3].mxu1  ;;  %v1256_v23 = vsel %vm1238_vm11, %v1252_v8, 0.0 }
 0x2e6   :  { %v1236_v12 = vsel %vm1224_vm10, %v1209_v10, 0.0 }
 0x2e7   :  { %v1242_v18 = vsel %vm1238_vm11, %v1236_v12, 0.0  ;;  %v1254_v21 = vmul.f32 %v1236_v12, %v1236_v12 }
 0x2e8   :  { %v1243_v22 = vadd.f32 %v1242_v18, %v1239_v14 }
 0x2e9   :  { %v1259_v24 = vsel %vm1238_vm11, %v1254_v21, 0.0 }
 0x2ea   :  { %v1246_v26 = vrot.slane %v1243_v22, 4  ;;  %v1260_v27 = vadd.f32 %v1259_v24, %v1256_v23 }
 0x2ec   :  { %v1247_v28 = vadd.f32 %v1246_v26, %v1243_v22  ;;  %v1263_v29 = vrot.slane %v1260_v27, 4 }
 0x2ee   :  { %v1248_v32 = vrot.slane %v1247_v28, 2  ;;  %v1264_v33 = vadd.f32 %v1263_v29, %v1260_v27 }
 0x2f0   :  { %v1249_v34 = vadd.f32 %v1248_v32, %v1247_v28  ;;  %v1265_v36 = vrot.slane %v1264_v33, 2 }
 0x2f2   :  { %v1250_v17 = vrot.slane %v1249_v34, 1  ;;  %v1266_v20 = vadd.f32 %v1265_v36, %v1264_v33 }
 0x2f4   :  { %v1251_v39 = vadd.f32 %v1250_v17, %v1249_v34  ;;  %v1267_v38 = vrot.slane %v1266_v20, 1 }
 0x2f6   :  { %v1268_v40 = vadd.f32 %v1267_v38, %v1266_v20  ;;  %v1269_v37 = vmul.f32 0.071428575, %v1251_v39 }
 0x2f8   :  { %v1270_v41 = vmul.f32 0.071428575, %v1268_v40  ;;  %v1271_v16 = vmul.f32 %v1269_v37, %v1269_v37 }
 0x2fa   :  { %v1272_v19 = vsub.f32 %v1270_v41, %v1271_v16 }
 0x2fc   :  { %v1273_v7 = vadd.f32 1e-05, %v1272_v19 }
 0x2fe   :  { %1749 = vrsqrt.f32 %v1273_v7 }
 0x308   :  { %v1750_v31 = vpop.eup %1749 }
 0x309   :  { %v1275_v54 = vmul.f32 %v1750_v31, %v1903_v11 }
 0x30b   :  { %v1276_v42 = vmul.f32 %v1275_v54, %v1269_v37  ;;  %v1284_v43 = vrot.slane %v1275_v54, %v1283_v30 }
 0x30d   :  { %v1278_v44 = vrot.slane %v1276_v42, 7  ;;  %v1287_v46 = vmul.f32 %v1284_v43, %v1236_v12  ;;  %v1285_v2 = vmul.f32 %v1284_v43, %v1234_v6  ;;  %v1286_v48 = vmul.f32 0.0, %v1284_v43 }
 0x30f   :  { %v1280_v47 = vsub.f32 %v1903_v11, %v1278_v44 }
 0x311   :  { %v1292_v49 = vrot.slane %v1280_v47, %v1291_v45 }
 0x313   :  { %v1294_v51 = vadd.f32 %v1292_v49, %v1286_v48  ;;  %v1295_v52 = vadd.f32 %v1292_v49, %v1287_v46  ;;  %v1293_v53 = vadd.f32 %v1292_v49, %v1285_v2 }
 0x315   :  { %v1298_v55 = vmul.f32 0.01, %v1294_v51  ;;  %v1299_v56 = vmul.f32 0.01, %v1295_v52  ;;  %v1297_v57 = vmul.f32 0.01, %v1293_v53 }
 0x317   :  { %v1302_v58 = vmax.f32 %v1294_v51, %v1298_v55  ;;  %v1301_v13 = vmax.f32 %v1293_v53, %v1297_v57  ;;  %v1303_v59 = vmax.f32 %v1295_v52, %v1299_v56 }
 0x319   :  { %1662 = vmatprep.mubr.msk.f32.mxu1 %vm1238_vm11, %v1301_v13 }
 0x31a   :  { %1663 = vmatmul.mubr.msk.f32.vlgmr.msra.gmra.mrb[4].mxu1 %vm1238_vm11, %v1302_v58 }
 0x31b   :  { %1665 = vmatprep.mubr.msk.f32.mxu1 %vm1238_vm11, %v1303_v59 }
 0x31e   :  { %1666 = vmatmul.mubr.msk.f32.gmra.mrb[6].mxu1 %vm1238_vm11, %v1302_v58 }
 0x3ed   :  { %v1664_v62 = vpop.f32.mrb[4].mxu1 }
 0x3ee   :  { %v1390_v35 = vpop.f32.mrb[5].mxu1 }
 0x3ef   :  { %v1391_v50 = vadd.f32 %v1390_v35, %v1308_v61 }
 0x3f1   :  { %v1408_v63 = vsel %vm1407_vm12, %v1391_v50, -inf  ;;  %v1667_v0 = vpop.f32.mrb[6].mxu1 }
 0x3f2   :  { %v1409_v9 = vrot.slane %v1408_v63, 4  ;;  %v1399_v1 = vpop.f32.mrb[7].mxu1 }
 0x3f3   :  { %v1400_v3 = vadd.f32 %v1399_v1, %v1308_v61 }
 0x3f4   :  { %v1410_v4 = vmax.f32 %v1408_v63, %v1409_v9 }
 0x3f5   :  { %v1415_v5 = vsel %vm1407_vm12, %v1400_v3, -inf }
 0x3f6   :  { %v1411_v6 = vrot.slane %v1410_v4, 2  ;;  %v1416_v25 = vrot.slane %v1415_v5, 4 }
 0x3f8   :  { %v1412_v8 = vmax.f32 %v1410_v4, %v1411_v6  ;;  %v1417_v10 = vmax.f32 %v1415_v5, %v1416_v25 }
 0x3fa   :  { %v1418_v12 = vrot.slane %v1417_v10, 2  ;;  %v1413_v14 = vrot.slane %v1412_v8, 1 }
 0x3fc   :  { %v1419_v15 = vmax.f32 %v1417_v10, %v1418_v12  ;;  %v1414_v11 = vmax.f32 %v1412_v8, %v1413_v14 }
 0x3fe   :  { %v1420_v18 = vrot.slane %v1419_v15, 1 }
 0x400   :  { %v1421_v21 = vmax.f32 %v1419_v15, %v1420_v18 }
 0x402   :  { %v1423_v22 = vsel %vm1422_vm13, %v1414_v11, %v1421_v21 }
 0x403   :  { %v1502_v23 = vmul.f32 -1.442695, %v1423_v22 }
 0x405   :  { %1751 = vpow2.f32 %v1502_v23 }
 0x40f   :  { %v1752_v24 = vpop.eup %1751 }
 0x410   :  { %v1427_v26 = vadd.f32 1.0, %v1752_v24 }
 0x412   :  { %1753 = vrcp.f32 %v1427_v26 }
 0x41c   :  { %v1754_v27 = vpop.eup %1753 }
 0x41d   :  { %v1430_v28 = vmul.f32 2.0, %v1754_v27 }
 0x41f   :  { %1432 = vst.msk [vmem:[#allocation2] sm:$0x3] %vm1431_vm14, %v1430_v28 }
 0x420   :  { %1766 = shalt.err (!%p1763_p4)
}
 0x421   :  { %s1767_s25 = scalar_lea.hbm %s2118_s4, 32 }
 0x422   :  { %p1768_p5 = scmp.ne.s32.totalorder %s2118_s4, %s1767_s25  ;;  %p1771_p6 = scmp.lt.u32.totalorder %s1767_s25, %s2118_s4 }
 0x424   :  { %p1773_p7 = pnand %p1771_p6, %p1768_p5 }
 0x426   :  { %1776 = shalt.err (!%p1773_p7)
}
 0x427   :  { %1442 = dma.vmem_to_hbm [thread:$0]  %s1440_s21, 32, %s2118_s4, [#allocation3]  }
 0x428   :  { %1777 = dma.done.wait [#allocation3], 32  }
 0x429   :  { %1778 = vsyncadd [#allocation3], 4294967264 }
 0x42a   :  { %1446 = vsyncpa [#allocation3], 1 }

</bundles_post_ra>
